<compile_context>
chip_gen: v5e
topology: v5e:2x2
jax: 0.10.0
libtpu: 0.0.40
codegen_flags: <defaults>
</compile_context>

<pallas_src>
import jax
import jax.numpy as jnp
from jax.experimental import pallas as pl
from jax.experimental.pallas import tpu as pltpu

_LANE = 128
_SUBLANE = 8


def _round_up(n, m):
    return ((n + m - 1) // m) * m


def _elm_forward_kernel(x_ref, w_ref, b_ref, beta_ref, out_ref):
    # Hidden layer: relu(x @ W + b). MXU matmul with f32 accumulation; x is
    # cast to the (possibly bf16) weight dtype on the VPU.
    x = x_ref[...].astype(w_ref.dtype)
    h = jnp.dot(x, w_ref[...], preferred_element_type=jnp.float32)
    h = jnp.maximum(h + b_ref[...], 0.0)
    # Output layer: sigmoid(h @ beta). Full-width (lane-dense) store.
    logits = jnp.dot(h.astype(beta_ref.dtype), beta_ref[...],
                     preferred_element_type=jnp.float32)
    out_ref[...] = jax.nn.sigmoid(logits).astype(out_ref.dtype)


def prepare_elm_params(weight, bias, beta, *, compute_dtype=jnp.bfloat16):
    """One-time parameter prep: lane-pad H/O, reshape bias, cast W/beta.

    Done once at init so the per-call forward never touches HBM for padding.
    """
    I, H = weight.shape
    Hb, O = beta.shape
    assert Hb == H and bias.shape == (H,)

    H_pad = _round_up(H, _LANE)
    O_pad = _round_up(O, _LANE)

    w_p = weight
    if H_pad != H:
        w_p = jnp.pad(w_p, ((0, 0), (0, H_pad - H)))
    b_p = bias
    if H_pad != H:
        b_p = jnp.pad(b_p, ((0, H_pad - H),))
    beta_p = beta
    if H_pad != H:
        beta_p = jnp.pad(beta_p, ((0, H_pad - H), (0, 0)))
    if O_pad != O:
        beta_p = jnp.pad(beta_p, ((0, 0), (0, O_pad - O)))

    return {
        "weight": w_p.astype(compute_dtype),          # (I, H_pad)
        "bias": b_p.reshape(1, H_pad).astype(jnp.float32),
        "beta": beta_p.astype(compute_dtype),          # (H_pad, O_pad)
        "out_dim": O,
    }


def _vmem_limit_bytes(tile_rows, I, H_pad, O_pad, x_itemsize, param_itemsize):
    x_b = tile_rows * I * x_itemsize
    w_b = I * H_pad * param_itemsize
    bias_b = H_pad * 4
    beta_b = H_pad * O_pad * param_itemsize
    h_b = tile_rows * H_pad * 4
    out_b = tile_rows * O_pad * x_itemsize
    # Double-buffer the per-step tiles (x/out), weights resident once,
    # f32 hidden intermediate, plus headroom for compiler scratch.
    needed = 2 * (x_b + out_b) + w_b + bias_b + beta_b + 2 * h_b + (4 << 20)
    # Clamp to v7x's 64 MiB physical VMEM so the same config never hard-fails
    # on the smallest generation; floor at the 32 MiB default scoped limit.
    # TODO(synk): re-derive against 128 MiB on v5e/v6e if I*H grows past this.
    return int(min(max(needed, 32 << 20), 64 << 20))


def elm_forward(x, params, *, batch_tile=256):
    """Fused ELM forward: sigmoid(relu(x @ weight + bias) @ beta).

    `params` must come from prepare_elm_params (pre-padded / pre-cast).
    """
    B, I = x.shape
    w_p = params["weight"]
    b2d = params["bias"]
    beta_p = params["beta"]
    O = params["out_dim"]
    assert w_p.shape[0] == I
    H_pad = w_p.shape[1]
    O_pad = beta_p.shape[1]

    batch_tile = max(_SUBLANE, _round_up(batch_tile, _SUBLANE))

    # Sublane-pad the batch only when needed (cheap / usually a no-op).
    B8 = _round_up(B, _SUBLANE)
    use_grid = B8 > batch_tile
    if use_grid:
        B_pad = _round_up(B, batch_tile)
        tile_rows = batch_tile
    else:
        B_pad = B8
        tile_rows = B_pad
    x_p = jnp.pad(x, ((0, B_pad - B), (0, 0))) if B_pad != B else x

    x_itemsize = jnp.dtype(x.dtype).itemsize
    param_itemsize = jnp.dtype(w_p.dtype).itemsize
    cost = pl.CostEstimate(
        flops=2 * B_pad * I * H_pad + 2 * B_pad * H_pad * O_pad,
        transcendentals=B_pad * O_pad,  # sigmoid
        bytes_accessed=(x_p.size * x_itemsize
                        + (w_p.size + beta_p.size) * param_itemsize
                        + b2d.size * 4
                        + B_pad * O_pad * x_itemsize),
    )
    vmem_bytes = _vmem_limit_bytes(tile_rows, I, H_pad, O_pad,
                                   x_itemsize, param_itemsize)
    out_shape = jax.ShapeDtypeStruct((B_pad, O_pad), x.dtype)

    if use_grid:
        # Batch-tiled grid: lets megacore (v7x: 2 TCs) shard rows across cores.
        grid = (B_pad // tile_rows,)
        y_full = pl.pallas_call(
            _elm_forward_kernel,
            out_shape=out_shape,
            grid=grid,
            in_specs=[
                pl.BlockSpec((tile_rows, I), lambda i: (i, 0)),
                pl.BlockSpec((I, H_pad), lambda i: (0, 0)),
                pl.BlockSpec((1, H_pad), lambda i: (0, 0)),
                pl.BlockSpec((H_pad, O_pad), lambda i: (0, 0)),
            ],
            out_specs=pl.BlockSpec((tile_rows, O_pad), lambda i: (i, 0)),
            compiler_params=pltpu.CompilerParams(
                dimension_semantics=("parallel",),
                vmem_limit_bytes=vmem_bytes),
            cost_estimate=cost,
        )(x_p, w_p, b2d, beta_p)
    else:
        # Gridless whole-array-in-VMEM path for small B: no pipeline
        # prologue/epilogue overhead on a microsecond-scale kernel.
        vmem = pl.BlockSpec(memory_space=pltpu.MemorySpace.VMEM)
        y_full = pl.pallas_call(
            _elm_forward_kernel,
            out_shape=out_shape,
            in_specs=[vmem, vmem, vmem, vmem],
            out_specs=vmem,
            compiler_params=pltpu.CompilerParams(vmem_limit_bytes=vmem_bytes),
            cost_estimate=cost,
        )(x_p, w_p, b2d, beta_p)

    return y_full[:B, :O]


if __name__ == "__main__":
    # Small shapes consistent with the module's forward.
    batch_size = 8
    input_size = 32
    hidden_size = 64
    output_size = 8

    key = jax.random.PRNGKey(0)
    kx, kw, kb, kbeta, kx2 = jax.random.split(key, 5)

    # Deterministic "randn"-style parameter init (module uses torch.randn).
    x = jax.random.normal(kx, (batch_size, input_size), dtype=jnp.float32)
    weight = jax.random.normal(kw, (input_size, hidden_size), dtype=jnp.float32)
    bias = jax.random.normal(kb, (hidden_size,), dtype=jnp.float32)
    beta = jax.random.normal(kbeta, (hidden_size, output_size), dtype=jnp.float32)

    # Pure-JAX f32 reference (matches the torch module's numerics).
    h_ref = jnp.maximum(x @ weight + bias, 0.0)
    y_ref = jax.nn.sigmoid(h_ref @ beta)

    # 1) f32 path: exact parity with the torch f32 forward (gridless path).
    params_f32 = prepare_elm_params(weight, bias, beta, compute_dtype=jnp.float32)
    y_f32 = jax.block_until_ready(elm_forward(x, params_f32))
    assert y_f32.shape == (batch_size, output_size)
    assert jnp.allclose(y_f32, y_ref, atol=1e-5, rtol=1e-5)

    # 2) bf16 MXU path (f32 accumulation / activations). Compare against a
    #    bf16-cast JAX reference; tolerance loosened vs the f32 check.
    params_bf16 = prepare_elm_params(weight, bias, beta, compute_dtype=jnp.bfloat16)
    y_bf16 = jax.block_until_ready(elm_forward(x, params_bf16))
    h16 = jnp.maximum(
        jnp.dot(x.astype(jnp.bfloat16), weight.astype(jnp.bfloat16),
                preferred_element_type=jnp.float32) + bias, 0.0)
    y_ref16 = jax.nn.sigmoid(
        jnp.dot(h16.astype(jnp.bfloat16), beta.astype(jnp.bfloat16),
                preferred_element_type=jnp.float32))
    assert y_bf16.shape == (batch_size, output_size)
    assert jnp.allclose(y_bf16, y_ref16, atol=2e-2, rtol=2e-2)

    # 3) Large-batch path exercises the batch-tiled, megacore-parallel grid.
    x_big = jax.random.normal(kx2, (512, input_size), dtype=jnp.float32)
    y_big = jax.block_until_ready(elm_forward(x_big, params_f32, batch_tile=256))
    y_big_ref = jax.nn.sigmoid(jnp.maximum(x_big @ weight + bias, 0.0) @ beta)
    assert y_big.shape == (512, output_size)
    assert jnp.allclose(y_big, y_big_ref, atol=1e-5, rtol=1e-5)

    print("KERNEL_OK")
</pallas_src>

<mosaic_0001>
module attributes {stable_mosaic.version = 11 : i64} {
  func.func @_elm_forward_kernel(%arg0: memref<8x32xf32, #tpu.memory_space<vmem>>, %arg1: memref<32x128xf32, #tpu.memory_space<vmem>>, %arg2: memref<1x128xf32, #tpu.memory_space<vmem>>, %arg3: memref<128x128xf32, #tpu.memory_space<vmem>>, %arg4: memref<8x128xf32, #tpu.memory_space<vmem>>) attributes {dimension_semantics = [], scalar_prefetch = 0 : i64, scratch_operands = 0 : i64, tpu.core_type = #tpu.core_type<tc>} {
    %c0 = arith.constant 0 : index
    %c0_0 = arith.constant 0 : index
    %0 = vector.load %arg0[%c0, %c0_0] : memref<8x32xf32, #tpu.memory_space<vmem>>, vector<8x32xf32>
    %c0_1 = arith.constant 0 : index
    %c0_2 = arith.constant 0 : index
    %1 = vector.load %arg1[%c0_1, %c0_2] : memref<32x128xf32, #tpu.memory_space<vmem>>, vector<32x128xf32>
    %cst = arith.constant dense<0.000000e+00> : vector<8x128xf32>
    %2 = tpu.matmul %0, %1, %cst {dimension_numbers = #tpu.dot_dimension_numbers<[1], [0], [0], [1], [0, 0, 1, 1], [], []>} : vector<8x32xf32>, vector<32x128xf32>, vector<8x128xf32> -> vector<8x128xf32>
    %c0_3 = arith.constant 0 : index
    %c0_4 = arith.constant 0 : index
    %3 = vector.load %arg2[%c0_3, %c0_4] : memref<1x128xf32, #tpu.memory_space<vmem>>, vector<1x128xf32>
    %4 = vector.broadcast %3 : vector<1x128xf32> to vector<8x128xf32>
    %5 = arith.addf %2, %4 : vector<8x128xf32>
    %cst_5 = arith.constant 0.000000e+00 : f32
    %6 = vector.broadcast %cst_5 : f32 to vector<8x128xf32>
    %7 = arith.maximumf %5, %6 : vector<8x128xf32>
    %c0_6 = arith.constant 0 : index
    %c0_7 = arith.constant 0 : index
    %8 = vector.load %arg3[%c0_6, %c0_7] : memref<128x128xf32, #tpu.memory_space<vmem>>, vector<128x128xf32>
    %cst_8 = arith.constant dense<0.000000e+00> : vector<8x128xf32>
    %9 = tpu.matmul %7, %8, %cst_8 {dimension_numbers = #tpu.dot_dimension_numbers<[1], [0], [0], [1], [0, 0, 1, 1], [], []>} : vector<8x128xf32>, vector<128x128xf32>, vector<8x128xf32> -> vector<8x128xf32>
    %10 = arith.negf %9 : vector<8x128xf32>
    %11 = math.exp %10 : vector<8x128xf32>
    %cst_9 = arith.constant 1.000000e+00 : f32
    %12 = vector.broadcast %cst_9 : f32 to vector<8x128xf32>
    %13 = arith.addf %12, %11 : vector<8x128xf32>
    %14 = arith.divf %12, %13 : vector<8x128xf32>
    %c0_10 = arith.constant 0 : index
    %c0_11 = arith.constant 0 : index
    %15 = vector.load %arg4[%c0_10, %c0_11] : memref<8x128xf32, #tpu.memory_space<vmem>>, vector<8x128xf32>
    tpu.vector_store %arg4[%c0_10, %c0_11], %14 {strides = array<i32>} : memref<8x128xf32, #tpu.memory_space<vmem>>, vector<8x128xf32>,
    return
  }
}

</mosaic_0001>

<bundles_post_ra>
// kernel: tpu_custom_call.1
= control target key start
LH: loop header
LB: loop body
LE: loop exit
PB: predicated region body
PF: predicated region fallthrough
CT: control target
= control target key end

     0   :  { %9 = vsyncpa [#allocation3], 0  ;;  %s332_s0 = inlined_call_operand.hbm [shape: f32[8,32], index: 0, kind: input, shape index: {}]   ;;  %s333_s1 = inlined_call_operand.hbm [shape: f32[32,128], index: 1, kind: input, shape index: {}]   ;;  %s334_s2 = inlined_call_operand.vmem [shape: f32[1,128], index: 2, kind: input, shape index: {}]   ;;  %s335_s3 = inlined_call_operand.hbm [shape: f32[128,128], index: 3, kind: input, shape index: {}]   ;;  %s336_s4 = inlined_call_operand.hbm [shape: f32[8,128], index: 4, kind: output, shape index: {}]  }
   0x1   :  { %10 = vsyncpa [#allocation6], 0  ;;  %s27_s17 = sshll.u32 %s333_s1, 4  ;;  %s28_s17 = int_to_ptr.hbm [resolvable:$true] %s27_s17 }
   0x2   :  { %11 = vsyncpa [#allocation4], 0  ;;  %s286_s18 = smov [#allocation5]   ;;  %s17_s22 = sshll.u32 %s332_s0, 4  ;;  %s18_s22 = int_to_ptr.hbm [resolvable:$true] %s17_s22 }
   0x3   :  { %s29_s19 = sshll.u32 %s286_s18, 4  ;;  %s287_s23 = smov 128   ;;  %s30_s19 = int_to_ptr.vmem [resolvable:$true] %s29_s19 }
   0x4   :  { %s288_s24 = smov 8   ;;  %s289_s25 = smov [#allocation2]  }
   0x5   :  { %35 = dma.hbm_to_vmem [thread:$0]  %s28_s17, 512, %s30_s19, [#allocation6], %s287_s23, %s287_s23, %s288_s24  }
   0x6   :  { %s19_s26 = sshll.u32 %s289_s25, 4  ;;  %s42_s29 = sshll.u32 %s335_s3, 4  ;;  %s20_s26 = int_to_ptr.vmem [resolvable:$true] %s19_s26  ;;  %s43_s29 = int_to_ptr.hbm [resolvable:$true] %s42_s29 }
   0x7   :  { %22 = dma.hbm_to_vmem [thread:$0]  %s18_s22, 128, %s20_s26, [#allocation3]  }
   0x8   :  { %s290_s1 = smov [#allocation7]  }
   0x9   :  { %s44_s30 = sshll.u32 %s290_s1, 4  ;;  %s45_s30 = int_to_ptr.vmem [resolvable:$true] %s44_s30 }
   0xa   :  { %50 = dma.hbm_to_vmem [thread:$0]  %s43_s29, 2048, %s45_s30, [#allocation6], %s287_s23, %s287_s23, %s288_s24  }
   0xb   :  { %280 = dma.done.wait [#allocation3], 128  }
   0xc   :  { %281 = vsyncadd [#allocation3], 4294967168 }
   0xd   :  { %282 = dma.done.wait [#allocation6], 2560  }
   0xe   :  { %283 = vsyncadd [#allocation6], 4294964736  ;;  %v67_v0 = vld [vmem:[#allocation5 + $0x18] sm:$0xff]  ;;  %v66_v1 = vld [vmem:[#allocation5 + $0x10] sm:$0xff]  ;;  %vm72_vm0 = vcmask 261120   ;;  %s291_s5 = smov [#allocation8]  }
   0xf   :  { %88 = vmatpush.msra.mxu0 %v67_v0  ;;  %v112_v2 = vld [vmem:[#allocation7 + $0x78] sm:$0xff]  ;;  %v65_v3 = vld [vmem:[#allocation5 + $0x8] sm:$0xff]  ;;  %v111_v4 = vld [vmem:[#allocation7 + $0x70] sm:$0xff]  ;;  %s158_s6 = sshll.u32 %s291_s5, 4  ;;  %s160_s8 = sshll.u32 %s336_s4, 4  ;;  %s159_s6 = int_to_ptr.vmem [resolvable:$true] %s158_s6  ;;  %s161_s8 = int_to_ptr.hbm [resolvable:$true] %s160_s8 }
  0x10   :  { %113 = vmatpush.msra.mxu1 %v112_v2  ;;  %v110_v5 = vld [vmem:[#allocation7 + $0x68] sm:$0xff]  ;;  %v64_v6 = vld [vmem:[#allocation5] sm:$0xff]  ;;  %v63_v7 = vld [vmem:[#allocation2] sm:$0xff] }
  0x11   :  { %89 = vmatpush.msra.mxu0 %v66_v1  ;;  %v109_v8 = vld [vmem:[#allocation7 + $0x60] sm:$0xff]  ;;  %v108_v9 = vld [vmem:[#allocation7 + $0x58] sm:$0xff]  ;;  %v107_v10 = vld [vmem:[#allocation7 + $0x50] sm:$0xff] }
  0x12   :  { %114 = vmatpush.msra.mxu1 %v111_v4  ;;  %v106_v11 = vld [vmem:[#allocation7 + $0x48] sm:$0xff]  ;;  %v105_v12 = vld [vmem:[#allocation7 + $0x40] sm:$0xff]  ;;  %v104_v13 = vld [vmem:[#allocation7 + $0x38] sm:$0xff] }
  0x13   :  { %90 = vmatpush.msra.mxu0 %v65_v3  ;;  %v103_v14 = vld [vmem:[#allocation7 + $0x30] sm:$0xff]  ;;  %v102_v15 = vld [vmem:[#allocation7 + $0x28] sm:$0xff]  ;;  %v101_v16 = vld [vmem:[#allocation7 + $0x20] sm:$0xff] }
  0x14   :  { %115 = vmatpush.msra.mxu1 %v110_v5  ;;  %v100_v17 = vld [vmem:[#allocation7 + $0x18] sm:$0xff]  ;;  %v99_v18 = vld [vmem:[#allocation7 + $0x10] sm:$0xff]  ;;  %v98_v19 = vld [vmem:[#allocation7 + $0x8] sm:$0xff] }
  0x15   :  { %91 = vmatpush.msra.mxu0 %v64_v6  ;;  %v97_v20 = vld [vmem:[#allocation7] sm:$0xff]  ;;  %v179_v21 = vld [vmem:[%s334_s2] ss:$0 sm:$0xff] }
  0x16   :  { %171 = vmatmul.msk.f32.vlgmr.msra.gmra.mxu0 %vm72_vm0, %v63_v7  ;;  %116 = vmatpush.msra.mxu1 %v109_v8 }
  0x18   :  { %117 = vmatpush.msra.mxu1 %v108_v9 }
  0x1a   :  { %118 = vmatpush.msra.mxu1 %v107_v10 }
  0x1c   :  { %119 = vmatpush.msra.mxu1 %v106_v11 }
  0x1e   :  { %120 = vmatpush.msra.mxu1 %v105_v12 }
  0x20   :  { %121 = vmatpush.msra.mxu1 %v104_v13 }
  0x22   :  { %122 = vmatpush.msra.mxu1 %v103_v14 }
  0x24   :  { %123 = vmatpush.msra.mxu1 %v102_v15 }
  0x26   :  { %124 = vmatpush.msra.mxu1 %v101_v16 }
  0x28   :  { %125 = vmatpush.msra.mxu1 %v100_v17 }
  0x2a   :  { %126 = vmatpush.msra.mxu1 %v99_v18 }
  0x2c   :  { %127 = vmatpush.msra.mxu1 %v98_v19 }
  0x2e   :  { %128 = vmatpush.msra.mxu1 %v97_v20 }
  0x93   :  { %v93_v22 = vpop.f32.mrf.mxu0 }
  0x94   :  { %v94_v23 = vadd.f32 %v179_v21, %v93_v22 }
  0x96   :  { %v96_v24 = vmax.f32 %v94_v23, 0.0 }
  0x98   :  { %129 = vmatmul.f32.vlgmr.msra.gmra.mxu1 %v96_v24 }
 0x115   :  { %v130_v25 = vpop.f32.mrf.mxu1 }
 0x116   :  { %v172_v26 = vmul.f32 -1.442695, %v130_v25 }
 0x118   :  { %180 = vpow2.f32 %v172_v26 }
 0x11e   :  { %v181_v27 = vpop.eup %180 }
 0x11f   :  { %v136_v28 = vadd.f32 1.0, %v181_v27 }
 0x121   :  { %182 = vrcp.f32 %v136_v28  ;;  %v148_v32 = vand.u32 2147483648, %v136_v28  ;;  %v146_v34 = vand.u32 2147483647, %v136_v28  ;;  %vm142_vm2 = vweird.f32 %v136_v28 }
 0x123   :  { %v149_v36 = vor.u32 1.1754944e-38, %v148_v32  ;;  %vm147_vm4 = vcmp.eq.f32.partialorder %v146_v34, 8.507059e+37 }
 0x127   :  { %v183_v29 = vpop.eup %182 }
 0x128   :  { %v138_v30 = vmul.f32 %v183_v29, %v136_v28  ;;  %vm143_vm1 = vweird.f32 %v183_v29 }
 0x129   :  { %vm144_vm3 = vmor %vm142_vm2, %vm143_vm1 }
 0x12a   :  { %v139_v31 = vsub.f32 1.0, %v138_v30 }
 0x12c   :  { %v140_v33 = vmul.f32 %v183_v29, %v139_v31 }
 0x12e   :  { %v141_v35 = vadd.f32 %v183_v29, %v140_v33 }
 0x130   :  { %v145_v37 = vsel %vm144_vm3, %v183_v29, %v141_v35 }
 0x131   :  { %v150_v38 = vsel %vm147_vm4, %v149_v36, %v145_v37 }
 0x132   :  { %152 = vst [vmem:[#allocation8] sm:$0xff] %v150_v38 }
 0x133   :  { %163 = dma.vmem_to_hbm [thread:$0]  %s159_s6, 128, %s161_s8, [#allocation4]  }
 0x134   :  { %284 = dma.done.wait [#allocation4], 128  }
 0x135   :  { %285 = vsyncadd [#allocation4], 4294967168 }
 0x136   :  { %168 = vsyncpa [#allocation3], 1 }
 0x137   :  { %169 = vsyncpa [#allocation6], 1 }
 0x138   :  { %170 = vsyncpa [#allocation4], 1 }

</bundles_post_ra>
